<compile_context>
chip_gen: v6e
topology: v6e:2x2x1
jax: 0.10.0
libtpu: 0.0.40
codegen_flags: <defaults>
</compile_context>

<pallas_src>
import functools

import jax
import jax.numpy as jnp
import numpy as np
from jax import lax
from jax.experimental import pallas as pl
from jax.experimental.pallas import tpu as pltpu


_ONEHOT_V_MAX = 2048                    # above this vocab, fall back to jnp.take
_DEFAULT_VMEM_CAP = 64 * 1024 * 1024    # conservative (v7x) if get_tpu_info unavailable


def _round_up(x, m):
    return (x + m - 1) // m * m


def _vmem_capacity_bytes():
    try:
        cap = getattr(pltpu.get_tpu_info(), "vmem_capacity_bytes", None)
        if cap:
            return int(cap)
    except Exception:
        pass
    return _DEFAULT_VMEM_CAP


def _layernorm_rows(x, gamma, beta, eps):
    # x: (T, D) f32; gamma/beta: (1, D) f32.  Biased variance == PyTorch LayerNorm.
    mean = jnp.mean(x, axis=-1, keepdims=True)
    centered = x - mean
    var = jnp.mean(centered * centered, axis=-1, keepdims=True)
    inv = lax.rsqrt(var + eps)
    return centered * inv * gamma + beta


# --------------------------------------------------------------------------- #
# VMEM-resident table path: one-hot x table MXU gather, no scratch buffers.   #
# --------------------------------------------------------------------------- #
def _vmem_table_kernel(ids_ref, table_ref, gamma_ref, beta_ref, out_ref, *,
                       eps, use_onehot):
    ids = ids_ref[...]                       # (tile, 1) int32, VMEM
    table = table_ref[...]                   # (V, D), VMEM-resident (constant block)
    if use_onehot:
        tile = ids.shape[0]
        vocab = table.shape[0]
        onehot = lax.broadcasted_iota(jnp.int32, (tile, vocab), 1) == ids
        # One-hot row selection on the MXU: a single 1.0 term per output row,
        # accumulated in f32, so the gathered values are exact.
        x = jnp.dot(onehot.astype(table.dtype), table,
                    preferred_element_type=jnp.float32)
    else:
        # TODO(synk): very-large-vocab gather relies on Mosaic's row-gather lowering.
        x = jnp.take(table, ids[:, 0], axis=0).astype(jnp.float32)
    y = _layernorm_rows(x,
                        gamma_ref[...].astype(jnp.float32),
                        beta_ref[...].astype(jnp.float32),
                        eps)
    out_ref[...] = y.astype(out_ref.dtype)


# --------------------------------------------------------------------------- #
# HBM-resident table fallback: per-row DMA gather, double-buffered across     #
# grid steps, single byte-congruent drain.                                    #
# --------------------------------------------------------------------------- #
def _hbm_table_kernel(ids_ref, table_hbm, gamma_ref, beta_ref, out_ref,
                      gbuf, sem, *, tile, eps):
    """Rows for tile i land in gbuf[i % 2]; tile i+1's DMAs are issued before the
    LayerNorm of tile i so the random-access HBM latency overlaps with compute.
    Grid axis must be "arbitrary" (sequential) because of the cross-step state."""
    i = pl.program_id(0)
    n = pl.num_programs(0)
    slot = lax.rem(i, 2)

    def issue(step, dst_slot):
        base = step * tile

        @pl.loop(0, tile)
        def _(r):
            tok = ids_ref[base + r]
            pltpu.make_async_copy(table_hbm.at[pl.ds(tok, 1), :],
                                  gbuf.at[dst_slot, pl.ds(r, 1), :],
                                  sem.at[dst_slot]).start()

    @pl.when(i == 0)
    def _():
        issue(0, 0)

    # Single byte-congruent drain: one wait covering the whole tile's bytes
    # (descriptor is used only for its size + semaphore; nothing is copied).
    pltpu.make_async_copy(gbuf.at[1 - slot], gbuf.at[slot], sem.at[slot]).wait()

    # Prefetch the next tile's rows while this tile's LayerNorm runs.
    @pl.when(i + 1 < n)
    def _():
        issue(i + 1, 1 - slot)

    x = gbuf[slot].astype(jnp.float32)
    y = _layernorm_rows(x,
                        gamma_ref[...].astype(jnp.float32),
                        beta_ref[...].astype(jnp.float32),
                        eps)
    out_ref[...] = y.astype(out_ref.dtype)


def gene_encoder(ids, emb_table, gamma, beta, *, eps=1e-5, tile=512,
                 force_hbm_table=False, out_dtype=jnp.float32):
    """Pallas GeneEncoder forward: LayerNorm(Embedding(ids)) -> (B, S, D)."""
    B, S = ids.shape
    V, D = emb_table.shape
    N = B * S
    itemsize = emb_table.dtype.itemsize

    # Row tile: multiple of 8, no larger than the (padded) token count.
    tile = int(max(8, min(tile, _round_up(N, 8))))
    tile = _round_up(tile, 8)
    n_pad = _round_up(N, tile)
    n_tiles = n_pad // tile

    # Pad with token id 0 (always a valid row); padded rows are sliced off later.
    flat_ids = jnp.pad(ids.reshape(N).astype(jnp.int32), (0, n_pad - N))

    gamma2 = gamma.reshape(1, D).astype(jnp.float32)
    beta2 = beta.reshape(1, D).astype(jnp.float32)

    table_bytes = V * D * itemsize
    vmem_cap = _vmem_capacity_bytes()
    # Generation-aware cap for keeping the table VMEM-resident (2x accounts for the
    # pipeline's default double-buffering of the constant-index table block).
    # TODO(synk): single-buffer the constant table/gamma/beta blocks with
    # pl.Buffered(1) once validated on this JAX version; that doubles this cap.
    table_cap = max(8 << 20, min(vmem_cap // 4, 48 << 20))
    use_vmem_table = (not force_hbm_table) and (table_bytes <= table_cap)

    ln_bytes = tile * D * 4           # f32 LN intermediates per tile

    if use_vmem_table:
        use_onehot = V <= _ONEHOT_V_MAX
        kernel = functools.partial(_vmem_table_kernel, eps=eps, use_onehot=use_onehot)
        grid_spec = pltpu.PrefetchScalarGridSpec(
            num_scalar_prefetch=0,
            grid=(n_tiles,),
            in_specs=[
                pl.BlockSpec((tile, 1), lambda i: (i, 0)),   # ids tile (VMEM)
                pl.BlockSpec((V, D), lambda i: (0, 0)),      # whole table, constant index
                pl.BlockSpec((1, D), lambda i: (0, 0)),      # gamma
                pl.BlockSpec((1, D), lambda i: (0, 0)),      # beta
            ],
            out_specs=pl.BlockSpec((tile, D), lambda i: (i, 0)),
            scratch_shapes=[],
        )
        args = (flat_ids.reshape(n_pad, 1), emb_table, gamma2, beta2)
        dim_sem = ("parallel",)       # row tiles are independent
        onehot_bytes = tile * V * 4 if use_onehot else 0
        vmem_needed = (2 * table_bytes                 # table (double-buffered)
                       + 2 * (tile * D * 4)            # output double buffer
                       + 2 * (tile * 128 * 4)          # ids blocks (lane-padded)
                       + 4 * ln_bytes + onehot_bytes)
        flops = 2 * n_pad * V * D + 8 * n_pad * D
    else:
        # TODO(synk): ids stay fully SMEM-resident for the DMA look-ahead; very long
        # B*S will pad SMEM to next_pow2(4*n_pad) bytes.
        kernel = functools.partial(_hbm_table_kernel, tile=tile, eps=eps)
        grid_spec = pltpu.PrefetchScalarGridSpec(
            num_scalar_prefetch=1,                     # flat ids -> SMEM (scalar indices)
            grid=(n_tiles,),
            in_specs=[
                pl.BlockSpec(memory_space=pl.ANY),     # table stays in HBM
                pl.BlockSpec((1, D), lambda i, ids: (0, 0)),
                pl.BlockSpec((1, D), lambda i, ids: (0, 0)),
            ],
            out_specs=pl.BlockSpec((tile, D), lambda i, ids: (i, 0)),
            scratch_shapes=[
                pltpu.VMEM((2, tile, D), emb_table.dtype),  # double-buffered gather
                pltpu.SemaphoreType.DMA((2,)),
            ],
        )
        args = (flat_ids, emb_table, gamma2, beta2)
        dim_sem = ("arbitrary",)      # cross-step DMA prefetch => sequential grid
        vmem_needed = (2 * tile * D * itemsize + 2 * (tile * D * 4) + 4 * ln_bytes)
        flops = 8 * n_pad * D

    # Raise the scoped-VMEM limit only when the per-chip defaults would be tight;
    # never request more than ~3/4 of the chip's physical VMEM (64 MiB on v7x).
    vmem_limit = None
    if vmem_needed > 12 * 1024 * 1024:
        vmem_limit = int(min(vmem_needed + (8 << 20), (vmem_cap * 3) // 4))

    cost = pl.CostEstimate(
        flops=int(flops),
        transcendentals=int(n_pad),
        bytes_accessed=int(n_pad * D * (itemsize + 4) + table_bytes + n_pad * 4),
    )

    out = pl.pallas_call(
        kernel,
        out_shape=jax.ShapeDtypeStruct((n_pad, D), out_dtype),
        grid_spec=grid_spec,
        compiler_params=pltpu.CompilerParams(
            # TODO(synk): consider pltpu.CORE_PARALLEL on v7x (2 TCs/chip) for the
            # row-tile axis of the VMEM path.
            dimension_semantics=dim_sem,
            vmem_limit_bytes=vmem_limit,
        ),
        cost_estimate=cost,
    )(*args)

    return out[:N].reshape(B, S, D)


def _reference(ids, emb_table, gamma, beta, eps=1e-5):
    x = jnp.take(emb_table, ids, axis=0)
    mean = jnp.mean(x, axis=-1, keepdims=True)
    var = jnp.mean((x - mean) ** 2, axis=-1, keepdims=True)
    return (x - mean) * lax.rsqrt(var + eps) * gamma + beta


if __name__ == "__main__":
    # Small, deterministic setup consistent with the module's __init__.
    num_embeddings = 64       # vocabulary of gene tokens
    embedding_dim = 128
    padding_idx = 0
    batch, seq = 2, 8
    eps = 1e-5

    key = jax.random.PRNGKey(0)
    k_emb, k_ids = jax.random.split(key)

    # nn.Embedding init: N(0, 1); padding_idx row zeroed (matches PyTorch forward).
    emb_table = jax.random.normal(k_emb, (num_embeddings, embedding_dim), jnp.float32)
    emb_table = emb_table.at[padding_idx].set(0.0)

    # nn.LayerNorm init: weight = 1, bias = 0.
    gamma = jnp.ones((embedding_dim,), jnp.float32)
    beta = jnp.zeros((embedding_dim,), jnp.float32)

    # Token ids, include some padding tokens.
    ids = jax.random.randint(k_ids, (batch, seq), 0, num_embeddings, dtype=jnp.int32)
    ids = ids.at[0, -2:].set(padding_idx)

    ref = _reference(ids, emb_table, gamma, beta, eps=eps)

    # Main path: VMEM-resident table, one-hot MXU gather.
    out = gene_encoder(ids, emb_table, gamma, beta, eps=eps)
    out = jax.block_until_ready(out)
    np.testing.assert_allclose(np.asarray(out), np.asarray(ref), rtol=1e-5, atol=1e-5)
    assert out.shape == (batch, seq, embedding_dim)

    # Fallback path: HBM-resident table, double-buffered per-row DMA gather.
    # tile=8 -> 2 grid steps, so the cross-step prefetch/drain path is exercised.
    out_hbm = gene_encoder(ids, emb_table, gamma, beta, eps=eps,
                           force_hbm_table=True, tile=8)
    out_hbm = jax.block_until_ready(out_hbm)
    np.testing.assert_allclose(np.asarray(out_hbm), np.asarray(ref), rtol=1e-5, atol=1e-5)

    print("KERNEL_OK")
</pallas_src>

<mosaic_0001>
module attributes {stable_mosaic.version = 11 : i64} {
  func.func @_vmem_table_kernel(%arg0: i32, %arg1: memref<16x1xi32, #tpu.memory_space<vmem>>, %arg2: memref<64x128xf32, #tpu.memory_space<vmem>>, %arg3: memref<1x128xf32, #tpu.memory_space<vmem>>, %arg4: memref<1x128xf32, #tpu.memory_space<vmem>>, %arg5: memref<16x128xf32, #tpu.memory_space<vmem>>) attributes {dimension_semantics = [#tpu.dimension_semantics<parallel>], iteration_bounds = array<i64: 1>, scalar_prefetch = 0 : i64, scratch_operands = 0 : i64, tpu.core_type = #tpu.core_type<tc>, window_params = [{transform_indices = @transform_0, window_bounds = array<i64: 16, 1>}, {pipeline_mode = #tpu.pipeline_mode<synchronous>, transform_indices = @transform_1, window_bounds = array<i64: 64, 128>}, {pipeline_mode = #tpu.pipeline_mode<synchronous>, transform_indices = @transform_2, window_bounds = array<i64: 1, 128>}, {pipeline_mode = #tpu.pipeline_mode<synchronous>, transform_indices = @transform_3, window_bounds = array<i64: 1, 128>}, {transform_indices = @transform_4, window_bounds = array<i64: 16, 128>}]} {
    %c0 = arith.constant 0 : index
    %c0_0 = arith.constant 0 : index
    %0 = vector.load %arg1[%c0, %c0_0] : memref<16x1xi32, #tpu.memory_space<vmem>>, vector<16x1xi32>
    %c0_1 = arith.constant 0 : index
    %c0_2 = arith.constant 0 : index
    %1 = vector.load %arg2[%c0_1, %c0_2] : memref<64x128xf32, #tpu.memory_space<vmem>>, vector<64x128xf32>
    %2 = tpu.iota {dimensions = array<i32: 1>} : vector<16x64xi32>
    %3 = vector.broadcast %0 : vector<16x1xi32> to vector<16x64xi32>
    %4 = arith.cmpi eq, %2, %3 : vector<16x64xi32>
    %5 = arith.extui %4 : vector<16x64xi1> to vector<16x64xi32>
    %6 = arith.sitofp %5 : vector<16x64xi32> to vector<16x64xf32>
    %cst = arith.constant dense<0.000000e+00> : vector<16x128xf32>
    %7 = tpu.matmul %6, %1, %cst {dimension_numbers = #tpu.dot_dimension_numbers<[1], [0], [0], [1], [0, 0, 1, 1], [], []>} : vector<16x64xf32>, vector<64x128xf32>, vector<16x128xf32> -> vector<16x128xf32>
    %c0_3 = arith.constant 0 : index
    %c0_4 = arith.constant 0 : index
    %8 = vector.load %arg3[%c0_3, %c0_4] : memref<1x128xf32, #tpu.memory_space<vmem>>, vector<1x128xf32>
    %c0_5 = arith.constant 0 : index
    %c0_6 = arith.constant 0 : index
    %9 = vector.load %arg4[%c0_5, %c0_6] : memref<1x128xf32, #tpu.memory_space<vmem>>, vector<1x128xf32>
    %cst_7 = arith.constant dense<0.000000e+00> : vector<16xf32>
    %10 = vector.multi_reduction <add>, %7, %cst_7 [1] : vector<16x128xf32> to vector<16xf32>
    %11 = vector.shape_cast %10 : vector<16xf32> to vector<16x1xf32>
    %cst_8 = arith.constant 1.280000e+02 : f32
    %12 = vector.broadcast %cst_8 : f32 to vector<16x1xf32>
    %13 = arith.divf %11, %12 : vector<16x1xf32>
    %14 = vector.broadcast %13 : vector<16x1xf32> to vector<16x128xf32>
    %15 = arith.subf %7, %14 : vector<16x128xf32>
    %16 = arith.mulf %15, %15 : vector<16x128xf32>
    %cst_9 = arith.constant dense<0.000000e+00> : vector<16xf32>
    %17 = vector.multi_reduction <add>, %16, %cst_9 [1] : vector<16x128xf32> to vector<16xf32>
    %18 = vector.shape_cast %17 : vector<16xf32> to vector<16x1xf32>
    %cst_10 = arith.constant 1.280000e+02 : f32
    %19 = vector.broadcast %cst_10 : f32 to vector<16x1xf32>
    %20 = arith.divf %18, %19 : vector<16x1xf32>
    %cst_11 = arith.constant 9.99999974E-6 : f32
    %21 = vector.broadcast %cst_11 : f32 to vector<16x1xf32>
    %22 = arith.addf %20, %21 : vector<16x1xf32>
    %23 = math.rsqrt %22 : vector<16x1xf32>
    %24 = vector.broadcast %23 : vector<16x1xf32> to vector<16x128xf32>
    %25 = arith.mulf %15, %24 : vector<16x128xf32>
    %26 = vector.broadcast %8 : vector<1x128xf32> to vector<16x128xf32>
    %27 = arith.mulf %25, %26 : vector<16x128xf32>
    %28 = vector.broadcast %9 : vector<1x128xf32> to vector<16x128xf32>
    %29 = arith.addf %27, %28 : vector<16x128xf32>
    %c0_12 = arith.constant 0 : index
    %c0_13 = arith.constant 0 : index
    %30 = vector.load %arg5[%c0_12, %c0_13] : memref<16x128xf32, #tpu.memory_space<vmem>>, vector<16x128xf32>
    tpu.vector_store %arg5[%c0_12, %c0_13], %29 {strides = array<i32>} : memref<16x128xf32, #tpu.memory_space<vmem>>, vector<16x128xf32>,
    return
  }
  func.func @transform_0(%arg0: i32) -> (i32, i32) {
    %c0_i32 = arith.constant 0 : i32
    %c0_i32_0 = arith.constant 0 : i32
    return %arg0, %c0_i32 : i32, i32
  }
  func.func @transform_1(%arg0: i32) -> (i32, i32) {
    %c0_i32 = arith.constant 0 : i32
    %c0_i32_0 = arith.constant 0 : i32
    %c0_i32_1 = arith.constant 0 : i32
    return %c0_i32, %c0_i32_0 : i32, i32
  }
  func.func @transform_2(%arg0: i32) -> (i32, i32) {
    %c0_i32 = arith.constant 0 : i32
    %c0_i32_0 = arith.constant 0 : i32
    %c0_i32_1 = arith.constant 0 : i32
    return %c0_i32, %c0_i32_0 : i32, i32
  }
  func.func @transform_3(%arg0: i32) -> (i32, i32) {
    %c0_i32 = arith.constant 0 : i32
    %c0_i32_0 = arith.constant 0 : i32
    %c0_i32_1 = arith.constant 0 : i32
    return %c0_i32, %c0_i32_0 : i32, i32
  }
  func.func @transform_4(%arg0: i32) -> (i32, i32) {
    %c0_i32 = arith.constant 0 : i32
    %c0_i32_0 = arith.constant 0 : i32
    return %arg0, %c0_i32 : i32, i32
  }
}

</mosaic_0001>

<bundles_post_ra>
// kernel: tpu_custom_call.1
= control target key start
LH: loop header
LB: loop body
LE: loop exit
PB: predicated region body
PF: predicated region fallthrough
CT: control target
= control target key end

     0   :  { %9 = vsyncpa [#allocation3], 0  ;;  %s343_s0 = inlined_call_operand.vmem [shape: s32[16,1], index: 0, kind: input, shape index: {}]   ;;  %s344_s1 = inlined_call_operand.hbm [shape: f32[64,128], index: 1, kind: input, shape index: {}]   ;;  %s345_s2 = inlined_call_operand.vmem [shape: f32[1,128], index: 2, kind: input, shape index: {}]   ;;  %s346_s3 = inlined_call_operand.vmem [shape: f32[1,128], index: 3, kind: input, shape index: {}]   ;;  %s347_s4 = inlined_call_operand.hbm [shape: f32[16,128], index: 4, kind: output, shape index: {}]  }
   0x1   :  { %10 = vsyncpa [#allocation4], 0  ;;  %s288_s15 = smov [#allocation2]  }
   0x2   :  { %s18_s16 = sshll.u32 %s288_s15, 4  ;;  %s19_s16 = int_to_ptr.vmem [resolvable:$true] %s18_s16 }
   0x3   :  { %s252_s17 = scalar_lea.vmem %s19_s16, 1024  ;;  %p257_p1 = scmp.lt.s32.totalorder %s19_s16, %s19_s16 }
   0x4   :  { %p253_p0 = scmp.ne.s32.totalorder %s19_s16, %s252_s17  ;;  %p258_p2 = scmp.lt.s32.totalorder %s252_s17, %s252_s17 }
   0x6   :  { %p259_p3 = por %p258_p2, %p257_p1 }
   0x8   :  { %p260_p4 = pnand %p259_p3, %p253_p0 }
   0xa   :  { %263 = shalt.err (!%p260_p4)
}
   0xb   :  { %s289_s18 = smov 128   ;;  %s290_s19 = smov 8  }
   0xc   :  { %24 = dma.hbm_to_vmem [thread:$0]  %s344_s1, 1024, %s19_s16, [#allocation3], %s289_s18, %s289_s18, %s290_s19  }
   0xd   :  { %284 = dma.done.wait [#allocation3], 1024  }
   0xe   :  { %285 = vsyncadd [#allocation3], 4294966272  ;;  %v291_v0 = vmov 0   ;;  %v32_v1 = vld [vmem:[%s343_s0] sm:$0xff]  ;;  %v41_v2 = vld [vmem:[#allocation2 + $0x38] sm:$0xff]  ;;  %v42_v11 = vlaneseq  ;;  %vm56_vm0 = vcmask 523264  }
   0xf   :  { %239 = vset.pattern.permute.xlu0 %v291_v0  ;;  %214 = vmatprep.subr.mxu0 %v41_v2  ;;  %v40_v3 = vld [vmem:[#allocation2 + $0x30] sm:$0xff]  ;;  %v33_v4 = vld [vmem:[%s343_s0 + $0x8] sm:$0xff]  ;;  %v38_v6 = vld [vmem:[#allocation2 + $0x20] sm:$0xff]  ;;  %v292_v14 = vmov 0.0   ;;  %s293_s28 = smov [#allocation5]  }
  0x10   :  { %45 = vperm.xlu0 %239, %v32_v1   ;;  %215 = vmatpush3.msra.mxu0 %v41_v2  ;;  %v39_v5 = vld [vmem:[#allocation2 + $0x28] sm:$0xff]  ;;  %v37_v7 = vld [vmem:[#allocation2 + $0x18] sm:$0xff]  ;;  %v36_v8 = vld [vmem:[#allocation2 + $0x10] sm:$0xff]  ;;  %v43_v12 = vand.u32 127, %v42_v11  ;;  %s186_s29 = sshll.u32 %s293_s28, 4  ;;  %s187_s29 = int_to_ptr.vmem [resolvable:$true] %s186_s29 }
  0x11   :  { %216 = vmatprep.subr.mxu0 %v40_v3  ;;  %v35_v9 = vld [vmem:[#allocation2 + $0x8] sm:$0xff]  ;;  %v34_v10 = vld [vmem:[#allocation2] sm:$0xff]  ;;  %s264_s30 = scalar_lea.vmem %s187_s29, 256  ;;  %p269_p6 = scmp.lt.s32.totalorder %s187_s29, %s187_s29 }
  0x12   :  { %217 = vmatpush3.msra.mxu0 %v40_v3  ;;  %v202_v35 = vld [vmem:[%s345_s2] ss:$0 sm:$0xff]  ;;  %p265_p5 = scmp.ne.s32.totalorder %s187_s29, %s264_s30  ;;  %p270_p7 = scmp.lt.s32.totalorder %s264_s30, %s264_s30 }
  0x13   :  { %218 = vmatprep.subr.mxu0 %v39_v5  ;;  %v203_v37 = vld [vmem:[%s346_s3] ss:$0 sm:$0xff] }
  0x14   :  { %48 = vperm.xlu0 %239, %v33_v4   ;;  %219 = vmatpush3.msra.mxu0 %v39_v5  ;;  %p271_p8 = por %p270_p7, %p269_p6 }
  0x15   :  { %220 = vmatprep.subr.mxu0 %v38_v6 }
  0x16   :  { %221 = vmatpush3.msra.mxu0 %v38_v6  ;;  %p272_p9 = pnand %p271_p8, %p265_p5 }
  0x17   :  { %222 = vmatprep.subr.mxu0 %v37_v7 }
  0x18   :  { %223 = vmatpush3.msra.mxu0 %v37_v7 }
  0x19   :  { %224 = vmatprep.subr.mxu0 %v36_v8 }
  0x1a   :  { %225 = vmatpush3.msra.mxu0 %v36_v8 }
  0x1b   :  { %226 = vmatprep.subr.mxu0 %v35_v9 }
  0x1c   :  { %227 = vmatpush3.msra.mxu0 %v35_v9 }
  0x1d   :  { %228 = vmatprep.subr.mxu0 %v34_v10 }
  0x1e   :  { %229 = vmatpush3.msra.mxu0 %v34_v10 }
  0x8b   :  { %v46_v13 = vpop.permute.xlu0 %45 }
  0x8c   :  { %vm50_vm1 = vcmp.eq.s32.totalorder %v43_v12, %v46_v13 }
  0x8d   :  { %v198_v15 = vsel %vm50_vm1, 1.0, %v292_v14 }
  0x8e   :  { %230 = vmatprep.mubr.msk.f32.mxu0 %vm56_vm0, %v198_v15 }
  0x8f   :  { %v49_v16 = vpop.permute.xlu0 %48 }
  0x90   :  { %vm51_vm2 = vcmp.eq.s32.totalorder %v43_v12, %v49_v16 }
  0x91   :  { %v199_v17 = vsel %vm51_vm2, 1.0, %v292_v14 }
  0x92   :  { %231 = vmatmul.mubr.msk.f32.vlgmr.msra.gmra.mxu0 %vm56_vm0, %v199_v17 }
 0x152   :  { %v232_v18 = vpop.f32.mrf.mxu0 }
 0x154   :  { %v129_v19 = vpop.f32.mrf.mxu0 }
 0x155   :  { %140 = vadd.xlane.f32.xlu1 %v129_v19 }
 0x159   :  { %142 = vadd.xlane.f32.xlu1 %v232_v18 }
 0x1de   :  { %v141_v20 = vpop.xlane.xlu1 %140 }
 0x1df   :  { %v145_v21 = vmul.f32 0.0078125, %v141_v20 }
 0x1e1   :  { %v147_v22 = vsub.f32 %v129_v19, %v145_v21 }
 0x1e2   :  { %v143_v23 = vpop.xlane.xlu1 %142 }
 0x1e3   :  { %v146_v24 = vmul.f32 0.0078125, %v143_v23  ;;  %v149_v25 = vmul.f32 %v147_v22, %v147_v22 }
 0x1e5   :  { %v148_v26 = vsub.f32 %v232_v18, %v146_v24  ;;  %151 = vadd.xlane.f32.xlu0 %v149_v25 }
 0x1e7   :  { %v150_v27 = vmul.f32 %v148_v26, %v148_v26 }
 0x1e9   :  { %153 = vadd.xlane.f32.xlu1 %v150_v27 }
 0x26e   :  { %v152_v28 = vpop.xlane.xlu0 %151 }
 0x26f   :  { %v155_v29 = vmul.f32 0.0078125, %v152_v28 }
 0x271   :  { %v157_v30 = vadd.f32 1e-05, %v155_v29 }
 0x272   :  { %v154_v31 = vpop.xlane.xlu1 %153 }
 0x273   :  { %240 = vrsqrt.f32 %v157_v30  ;;  %v156_v32 = vmul.f32 0.0078125, %v154_v31 }
 0x275   :  { %v158_v33 = vadd.f32 1e-05, %v156_v32 }
 0x277   :  { %242 = vrsqrt.f32 %v158_v33 }
 0x280   :  { %v241_v34 = vpop.eup %240 }
 0x281   :  { %v161_v36 = vmul.f32 %v241_v34, %v147_v22 }
 0x283   :  { %v169_v38 = vmul.f32 %v202_v35, %v161_v36 }
 0x284   :  { %v243_v39 = vpop.eup %242 }
 0x285   :  { %v162_v40 = vmul.f32 %v243_v39, %v148_v26  ;;  %v177_v41 = vadd.f32 %v203_v37, %v169_v38 }
 0x287   :  { %v170_v42 = vmul.f32 %v202_v35, %v162_v40  ;;  %179 = vst [vmem:[#allocation5] sm:$0xff] %v177_v41 }
 0x289   :  { %v178_v43 = vadd.f32 %v203_v37, %v170_v42 }
 0x28b   :  { %180 = vst [vmem:[#allocation5 + $0x8] sm:$0xff] %v178_v43 }
 0x28c   :  { %275 = shalt.err (!%p272_p9)
}
 0x28d   :  { %192 = dma.vmem_to_hbm [thread:$0]  %s187_s29, 256, %s347_s4, [#allocation4], %s289_s18, %s289_s18, %s290_s19  }
 0x28e   :  { %286 = dma.done.wait [#allocation4], 256  }
 0x28f   :  { %287 = vsyncadd [#allocation4], 4294967040 }
 0x290   :  { %196 = vsyncpa [#allocation3], 1 }
 0x291   :  { %197 = vsyncpa [#allocation4], 1 }

</bundles_post_ra>
